<compile_context>
chip_gen: v7x
topology: tpu7x:2x2x1
jax: 0.10.0
libtpu: 0.0.40
codegen_flags: <defaults>
</compile_context>

<pallas_src>
import functools

import jax
import jax.numpy as jnp
import numpy as np
from jax.experimental import pallas as pl
from jax.experimental.pallas import tpu as pltpu


# ---------------------------------------------------------------------------
# Shared FC chain: the three 1x1-conv "convFC" branches on pooled vectors.
# ---------------------------------------------------------------------------
def _fc_chain(rgb_s, dep_s, wa1t, ba1, wa2t, ba2, wm1t, wm2t, ws1t, ws2t):
    """rgb_s / dep_s: (Bt, C) f32 pooled (avg+max) vectors -> sum_fea (Bt, C) f32."""
    # avg_convFC: Conv1x1(+bias) -> ReLU -> Conv1x1(+bias) -> Sigmoid
    h = jnp.dot(rgb_s, wa1t[...], preferred_element_type=jnp.float32) + ba1[...]
    h = jnp.maximum(h, 0.0)
    rgb_fea = jax.nn.sigmoid(
        jnp.dot(h, wa2t[...], preferred_element_type=jnp.float32) + ba2[...])

    # max_convFC: Conv1x1 -> ReLU -> Conv1x1 -> Sigmoid (no bias)
    h2 = jnp.maximum(
        jnp.dot(dep_s, wm1t[...], preferred_element_type=jnp.float32), 0.0)
    depth_fea = jax.nn.sigmoid(
        jnp.dot(h2, wm2t[...], preferred_element_type=jnp.float32))

    # sum_convFC: Conv1x1 -> ReLU -> Conv1x1 -> Sigmoid (no bias)
    h3 = jnp.maximum(
        jnp.dot(rgb_fea + depth_fea, ws1t[...],
                preferred_element_type=jnp.float32), 0.0)
    return jax.nn.sigmoid(
        jnp.dot(h3, ws2t[...], preferred_element_type=jnp.float32))


# ---------------------------------------------------------------------------
# Single-pass kernel: whole (Bt, C, HW) block per grid step.
# ---------------------------------------------------------------------------
def _joint_attention_kernel(rgb_ref, depth_ref,
                            wa1t, ba1, wa2t, ba2, wm1t, wm2t, ws1t, ws2t,
                            rgb_out_ref, depth_out_ref):
    hw = rgb_ref.shape[-1]
    inv_hw = jnp.float32(1.0 / hw)

    # Bind each input tile once; reuse it for pooling and the final multiply.
    x_r = rgb_ref[...]
    x_d = depth_ref[...]

    # AdaptiveAvgPool2d(1) / AdaptiveMaxPool2d(1): lane reductions with f32
    # accumulation (sum accumulates in f32, max stays in the input dtype).
    rgb_s = (jnp.sum(x_r, axis=-1, dtype=jnp.float32) * inv_hw
             + jnp.max(x_r, axis=-1).astype(jnp.float32))
    dep_s = (jnp.max(x_d, axis=-1).astype(jnp.float32)
             + jnp.sum(x_d, axis=-1, dtype=jnp.float32) * inv_hw)

    sum_fea = _fc_chain(rgb_s, dep_s, wa1t, ba1, wa2t, ba2,
                        wm1t, wm2t, ws1t, ws2t)

    # x * s + x == x * (s + 1); keep the scale in f32, cast only the product.
    scale = (sum_fea + 1.0)[:, :, None]                       # (Bt, C, 1) f32
    rgb_out_ref[...] = (x_r * scale).astype(rgb_out_ref.dtype)
    depth_out_ref[...] = (x_d * scale).astype(depth_out_ref.dtype)


# ---------------------------------------------------------------------------
# Two-pass fallback (large HW): pass 1 = HW-tiled pooling + FC -> scale.
# ---------------------------------------------------------------------------
def _pool_fc_kernel(rgb_ref, depth_ref,
                    wa1t, ba1, wa2t, ba2, wm1t, wm2t, ws1t, ws2t,
                    scale_ref,
                    rsum, rmax, dsum, dmax,
                    *, hw_total):
    j = pl.program_id(1)
    nj = pl.num_programs(1)
    hwt = rgb_ref.shape[-1]

    @pl.when(j == 0)
    def _():
        rsum[...] = jnp.zeros_like(rsum)
        dsum[...] = jnp.zeros_like(dsum)
        rmax[...] = jnp.full_like(rmax, -jnp.inf)
        dmax[...] = jnp.full_like(dmax, -jnp.inf)

    x_r = rgb_ref[...]
    x_d = depth_ref[...]

    if hw_total % hwt != 0:
        # Mask padded lanes of the (possibly partial) last HW block.
        lane = jax.lax.broadcasted_iota(jnp.int32, (1, 1, hwt), 2)
        valid = (j * hwt + lane) < hw_total
        x_r_sum = jnp.where(valid, x_r, 0)
        x_d_sum = jnp.where(valid, x_d, 0)
        x_r_max = jnp.where(valid, x_r, -jnp.inf)
        x_d_max = jnp.where(valid, x_d, -jnp.inf)
    else:
        x_r_sum = x_r_max = x_r
        x_d_sum = x_d_max = x_d

    rsum[...] += jnp.sum(x_r_sum, axis=-1, dtype=jnp.float32)
    dsum[...] += jnp.sum(x_d_sum, axis=-1, dtype=jnp.float32)
    rmax[...] = jnp.maximum(rmax[...], jnp.max(x_r_max, axis=-1).astype(jnp.float32))
    dmax[...] = jnp.maximum(dmax[...], jnp.max(x_d_max, axis=-1).astype(jnp.float32))

    @pl.when(j == nj - 1)
    def _():
        inv_hw = jnp.float32(1.0 / hw_total)
        rgb_s = rsum[...] * inv_hw + rmax[...]
        dep_s = dmax[...] + dsum[...] * inv_hw
        sum_fea = _fc_chain(rgb_s, dep_s, wa1t, ba1, wa2t, ba2,
                            wm1t, wm2t, ws1t, ws2t)
        scale_ref[...] = (sum_fea + 1.0)[:, :, None]          # (Bt, C, 1) f32


def _apply_scale_kernel(scale_ref, rgb_ref, depth_ref, rgb_out_ref, depth_out_ref):
    s = scale_ref[...]                                        # (Bt, C, 1) f32
    rgb_out_ref[...] = (rgb_ref[...] * s).astype(rgb_out_ref.dtype)
    depth_out_ref[...] = (depth_ref[...] * s).astype(depth_out_ref.dtype)


# ---------------------------------------------------------------------------
# Host-side helpers.
# ---------------------------------------------------------------------------
def _vmem_capacity_bytes():
    try:
        info = pltpu.get_tpu_info()
        cap = getattr(info, "vmem_capacity_bytes", None)
        if cap:
            return int(cap)
    except Exception:
        pass
    return 64 * 1024 * 1024   # conservative default (v7x per-TC VMEM)


def _round_up(x, m):
    return -(-x // m) * m


def _const_spec(shape, ngrid):
    zeros = (0,) * len(shape)
    if ngrid == 1:
        return pl.BlockSpec(shape, lambda i: zeros)
    return pl.BlockSpec(shape, lambda i, j: zeros)


def joint_attention(rgb, depth, params, *, donate_inputs=False,
                    force_two_pass=False, max_hw_tile=None):
    """rgb, depth: (B, C, H, W) NCHW, same shape. Returns (rgb_out, depth_out)."""
    B, C, H, W = rgb.shape
    HW = H * W
    rgb2 = rgb.reshape(B, C, HW)
    depth2 = depth.reshape(B, C, HW)

    wa1, ba1, wa2, ba2, wm1, wm2, ws1, ws2 = params
    Ch = wa1.shape[0]

    # Pre-transpose weights / reshape biases once on the host so the in-kernel
    # FC chain is plain (Bt,C)@(C,Ch) / (Bt,Ch)@(Ch,C) matmuls.
    wa1_t, wa2_t = wa1.T, wa2.T
    wm1_t, wm2_t = wm1.T, wm2.T
    ws1_t, ws2_t = ws1.T, ws2.T
    ba1_r = ba1.reshape(1, Ch)
    ba2_r = ba2.reshape(1, C)
    weights = (wa1_t, ba1_r, wa2_t, ba2_r, wm1_t, wm2_t, ws1_t, ws2_t)
    weight_shapes = [(C, Ch), (1, Ch), (Ch, C), (1, C),
                     (C, Ch), (Ch, C), (C, Ch), (Ch, C)]
    weight_bytes = sum(int(np.prod(w.shape)) * jnp.dtype(w.dtype).itemsize
                       for w in weights)

    itemsize = jnp.dtype(rgb.dtype).itemsize

    # --- Generation-aware VMEM budgeting ---------------------------------
    vmem_cap = _vmem_capacity_bytes()                       # 128 MiB v5e/v6e, 64 MiB v7x
    budget = min((vmem_cap * 3) // 4, vmem_cap - (8 << 20)) # headroom for Mosaic scratch
    budget = max(budget, 16 << 20)
    avail = budget - 2 * weight_bytes - (2 << 20)

    # The single-pass pipeline holds 8 (Bt,C,HW) copies (2 inputs + 2 outputs,
    # double-buffered) plus transient f32 temporaries on the multiply path.
    per_bt_bytes = C * HW * (8 * itemsize + 8)
    use_two_pass = force_two_pass or per_bt_bytes > avail or avail <= 0

    if not use_two_pass:
        # ------------------------- single-pass path -----------------------
        bt_vmem = max(1, avail // per_bt_bytes)
        bt_target = max(1, (8 << 20) // (C * HW * itemsize))   # <= ~8 MiB / block
        bt_cores = _round_up(B, 2) // 2 if B >= 2 else 1       # >= 2 grid steps
        Bt = int(max(1, min(B, bt_vmem, bt_target, bt_cores)))
        num_blocks = pl.cdiv(B, Bt)

        tile_bytes = Bt * C * HW * itemsize
        need = 8 * tile_bytes + 2 * Bt * C * HW * 4 + 2 * weight_bytes + (2 << 20)
        vmem_limit = int(min(max(need, 16 << 20), budget))

        x_spec = pl.BlockSpec((Bt, C, HW), lambda i: (i, 0, 0))
        # Note: weights are constant-index; a Buffered(1) single-buffer would
        # shave a little VMEM but is left at the default for robustness.
        w_specs = [_const_spec(s, 1) for s in weight_shapes]

        cost = pl.CostEstimate(
            flops=int(8 * B * C * HW + 12 * B * C * Ch),
            transcendentals=int(3 * B * C),
            bytes_accessed=int(4 * B * C * HW * itemsize + weight_bytes),
        )
        io_aliases = {0: 0, 1: 1} if donate_inputs else {}

        rgb_out, depth_out = pl.pallas_call(
            _joint_attention_kernel,
            out_shape=(jax.ShapeDtypeStruct((B, C, HW), rgb.dtype),
                       jax.ShapeDtypeStruct((B, C, HW), depth.dtype)),
            grid=(num_blocks,),
            in_specs=[x_spec, x_spec] + w_specs,
            out_specs=(x_spec, x_spec),
            input_output_aliases=io_aliases,
            cost_estimate=cost,
            compiler_params=pltpu.CompilerParams(
                dimension_semantics=("parallel",),
                vmem_limit_bytes=vmem_limit),
        )(rgb2, depth2, *weights)
    else:
        # -------------------- two-pass HW-tiled fallback -------------------
        # TODO(synk): a channels-last (Bt, HW, C) layout would make the store
        # path lane-dense for deep stages (HW < 128), but needs NHWC inputs
        # without an extra HBM transpose; not done here.
        Btf = 1
        hw_elem = C * (8 * itemsize + 8)   # pipelined copies + f32 temps per HW elem
        hwt = max(128, (max(avail, hw_elem * 128) // hw_elem) // 128 * 128)
        hwt_target = max(128, ((4 << 20) // (C * itemsize)) // 128 * 128)
        hwt = min(hwt, hwt_target, _round_up(HW, 128))
        if max_hw_tile is not None:
            hwt = min(hwt, _round_up(int(max_hw_tile), 128))
        hwt = max(hwt, 128)
        nb = pl.cdiv(B, Btf)
        nhw = pl.cdiv(HW, hwt)

        x_spec = pl.BlockSpec((Btf, C, hwt), lambda i, j: (i, 0, j))
        s_spec = pl.BlockSpec((Btf, C, 1), lambda i, j: (i, 0, 0))
        w_specs = [_const_spec(s, 2) for s in weight_shapes]

        pool_cost = pl.CostEstimate(
            flops=int(4 * B * C * HW + 12 * B * C * Ch),
            transcendentals=int(3 * B * C),
            bytes_accessed=int(2 * B * C * HW * itemsize + weight_bytes),
        )
        scale = pl.pallas_call(
            functools.partial(_pool_fc_kernel, hw_total=HW),
            out_shape=jax.ShapeDtypeStruct((B, C, 1), jnp.float32),
            grid=(nb, nhw),
            in_specs=[x_spec, x_spec] + w_specs,
            out_specs=s_spec,
            scratch_shapes=[pltpu.VMEM((Btf, C), jnp.float32)] * 4,
            cost_estimate=pool_cost,
            compiler_params=pltpu.CompilerParams(
                dimension_semantics=("parallel", "arbitrary"),
                vmem_limit_bytes=int(budget)),
        )(rgb2, depth2, *weights)

        apply_cost = pl.CostEstimate(
            flops=int(4 * B * C * HW),
            transcendentals=0,
            bytes_accessed=int(4 * B * C * HW * itemsize),
        )
        io_aliases = {1: 0, 2: 1} if donate_inputs else {}

        rgb_out, depth_out = pl.pallas_call(
            _apply_scale_kernel,
            out_shape=(jax.ShapeDtypeStruct((B, C, HW), rgb.dtype),
                       jax.ShapeDtypeStruct((B, C, HW), depth.dtype)),
            grid=(nb, nhw),
            in_specs=[s_spec, x_spec, x_spec],
            out_specs=(x_spec, x_spec),
            input_output_aliases=io_aliases,
            cost_estimate=apply_cost,
            compiler_params=pltpu.CompilerParams(
                dimension_semantics=("parallel", "parallel"),
                vmem_limit_bytes=int(budget)),
        )(scale, rgb2, depth2)

    return rgb_out.reshape(B, C, H, W), depth_out.reshape(B, C, H, W)


# ---------------------------------------------------------------------------
# Pure-JAX reference replicating the PyTorch forward pass.
# ---------------------------------------------------------------------------
def reference_joint_attention(rgb, depth, params):
    wa1, ba1, wa2, ba2, wm1, wm2, ws1, ws2 = params

    def pool(x):
        return jnp.mean(x, axis=(2, 3)), jnp.max(x, axis=(2, 3))

    def fc(x, w1, w2, b1=None, b2=None):
        h = x @ w1.T
        if b1 is not None:
            h = h + b1[:, 0]
        h = jnp.maximum(h, 0.0)
        o = h @ w2.T
        if b2 is not None:
            o = o + b2[:, 0]
        return jax.nn.sigmoid(o)

    r_avg, r_max = pool(rgb)
    d_avg, d_max = pool(depth)
    rgb_fea = fc(r_avg + r_max, wa1, wa2, ba1, ba2)
    depth_fea = fc(d_max + d_avg, wm1, wm2)
    sum_fea = fc(rgb_fea + depth_fea, ws1, ws2)[:, :, None, None]
    return rgb * sum_fea + rgb, depth * sum_fea + depth


def init_params(key, C, ratio=16):
    Ch = C // ratio
    ks = jax.random.split(key, 8)
    scale = 0.1
    wa1 = scale * jax.random.normal(ks[0], (Ch, C), jnp.float32)
    ba1 = scale * jax.random.normal(ks[1], (Ch, 1), jnp.float32)
    wa2 = scale * jax.random.normal(ks[2], (C, Ch), jnp.float32)
    ba2 = scale * jax.random.normal(ks[3], (C, 1), jnp.float32)
    wm1 = scale * jax.random.normal(ks[4], (Ch, C), jnp.float32)
    wm2 = scale * jax.random.normal(ks[5], (C, Ch), jnp.float32)
    ws1 = scale * jax.random.normal(ks[6], (Ch, C), jnp.float32)
    ws2 = scale * jax.random.normal(ks[7], (C, Ch), jnp.float32)
    return (wa1, ba1, wa2, ba2, wm1, wm2, ws1, ws2)


if __name__ == "__main__":
    key = jax.random.PRNGKey(0)
    k_rgb, k_depth, k_params, k_rgb2, k_depth2 = jax.random.split(key, 5)

    # ratio=16 ⇒ C must be ≥ 16; small ResNet34-ish shapes.
    B, C, H, W = 2, 32, 16, 16
    rgb = jax.random.normal(k_rgb, (B, C, H, W), jnp.float32)
    depth = jax.random.normal(k_depth, (B, C, H, W), jnp.float32)
    params = init_params(k_params, C, ratio=16)

    # Single-pass (default) path.
    rgb_out, depth_out = joint_attention(rgb, depth, params)
    jax.block_until_ready((rgb_out, depth_out))
    rgb_ref, depth_ref = reference_joint_attention(rgb, depth, params)
    np.testing.assert_allclose(np.asarray(rgb_out), np.asarray(rgb_ref),
                               rtol=1e-4, atol=1e-5)
    np.testing.assert_allclose(np.asarray(depth_out), np.asarray(depth_ref),
                               rtol=1e-4, atol=1e-5)

    # Two-pass HW-tiled fallback (large-HW / v7x path), forced small here to
    # exercise partial-HW-block masking (15*15 = 225 with a 128-lane tile).
    H2 = W2 = 15
    rgb_b = jax.random.normal(k_rgb2, (B, C, H2, W2), jnp.float32)
    depth_b = jax.random.normal(k_depth2, (B, C, H2, W2), jnp.float32)
    rgb_out2, depth_out2 = joint_attention(rgb_b, depth_b, params,
                                           force_two_pass=True, max_hw_tile=128)
    jax.block_until_ready((rgb_out2, depth_out2))
    rgb_ref2, depth_ref2 = reference_joint_attention(rgb_b, depth_b, params)
    np.testing.assert_allclose(np.asarray(rgb_out2), np.asarray(rgb_ref2),
                               rtol=1e-4, atol=1e-5)
    np.testing.assert_allclose(np.asarray(depth_out2), np.asarray(depth_ref2),
                               rtol=1e-4, atol=1e-5)

    print("KERNEL_OK")
</pallas_src>

<mosaic_0001>
module attributes {stable_mosaic.version = 11 : i64} {
  func.func @_joint_attention_kernel(%arg0: i32, %arg1: memref<1x32x256xf32, #tpu.memory_space<vmem>>, %arg2: memref<1x32x256xf32, #tpu.memory_space<vmem>>, %arg3: memref<32x2xf32, #tpu.memory_space<vmem>>, %arg4: memref<1x2xf32, #tpu.memory_space<vmem>>, %arg5: memref<2x32xf32, #tpu.memory_space<vmem>>, %arg6: memref<1x32xf32, #tpu.memory_space<vmem>>, %arg7: memref<32x2xf32, #tpu.memory_space<vmem>>, %arg8: memref<2x32xf32, #tpu.memory_space<vmem>>, %arg9: memref<32x2xf32, #tpu.memory_space<vmem>>, %arg10: memref<2x32xf32, #tpu.memory_space<vmem>>, %arg11: memref<1x32x256xf32, #tpu.memory_space<vmem>>, %arg12: memref<1x32x256xf32, #tpu.memory_space<vmem>>) attributes {dimension_semantics = [#tpu.dimension_semantics<parallel>], iteration_bounds = array<i64: 2>, scalar_prefetch = 0 : i64, scratch_operands = 0 : i64, tpu.core_type = #tpu.core_type<tc>, window_params = [{transform_indices = @transform_0, window_bounds = array<i64: 1, 32, 256>}, {transform_indices = @transform_1, window_bounds = array<i64: 1, 32, 256>}, {pipeline_mode = #tpu.pipeline_mode<synchronous>, transform_indices = @transform_2, window_bounds = array<i64: 32, 2>}, {pipeline_mode = #tpu.pipeline_mode<synchronous>, transform_indices = @transform_3, window_bounds = array<i64: 1, 2>}, {pipeline_mode = #tpu.pipeline_mode<synchronous>, transform_indices = @transform_4, window_bounds = array<i64: 2, 32>}, {pipeline_mode = #tpu.pipeline_mode<synchronous>, transform_indices = @transform_5, window_bounds = array<i64: 1, 32>}, {pipeline_mode = #tpu.pipeline_mode<synchronous>, transform_indices = @transform_6, window_bounds = array<i64: 32, 2>}, {pipeline_mode = #tpu.pipeline_mode<synchronous>, transform_indices = @transform_7, window_bounds = array<i64: 2, 32>}, {pipeline_mode = #tpu.pipeline_mode<synchronous>, transform_indices = @transform_8, window_bounds = array<i64: 32, 2>}, {pipeline_mode = #tpu.pipeline_mode<synchronous>, transform_indices = @transform_9, window_bounds = array<i64: 2, 32>}, {transform_indices = @transform_10, window_bounds = array<i64: 1, 32, 256>}, {transform_indices = @transform_11, window_bounds = array<i64: 1, 32, 256>}]} {
    %c0 = arith.constant 0 : index
    %c0_0 = arith.constant 0 : index
    %c0_1 = arith.constant 0 : index
    %0 = vector.load %arg1[%c0, %c0_0, %c0_1] : memref<1x32x256xf32, #tpu.memory_space<vmem>>, vector<1x32x256xf32>
    %c0_2 = arith.constant 0 : index
    %c0_3 = arith.constant 0 : index
    %c0_4 = arith.constant 0 : index
    %1 = vector.load %arg2[%c0_2, %c0_3, %c0_4] : memref<1x32x256xf32, #tpu.memory_space<vmem>>, vector<1x32x256xf32>
    %cst = arith.constant dense<0.000000e+00> : vector<1x32xf32>
    %2 = vector.multi_reduction <add>, %0, %cst [2] : vector<1x32x256xf32> to vector<1x32xf32>
    %cst_5 = arith.constant 3.906250e-03 : f32
    %3 = vector.broadcast %cst_5 : f32 to vector<1x32xf32>
    %4 = arith.mulf %2, %3 : vector<1x32xf32>
    %cst_6 = arith.constant dense<0xFF800000> : vector<1x32xf32>
    %5 = vector.multi_reduction <maximumf>, %0, %cst_6 [2] : vector<1x32x256xf32> to vector<1x32xf32>
    %6 = arith.addf %4, %5 : vector<1x32xf32>
    %cst_7 = arith.constant dense<0xFF800000> : vector<1x32xf32>
    %7 = vector.multi_reduction <maximumf>, %1, %cst_7 [2] : vector<1x32x256xf32> to vector<1x32xf32>
    %cst_8 = arith.constant dense<0.000000e+00> : vector<1x32xf32>
    %8 = vector.multi_reduction <add>, %1, %cst_8 [2] : vector<1x32x256xf32> to vector<1x32xf32>
    %cst_9 = arith.constant 3.906250e-03 : f32
    %9 = vector.broadcast %cst_9 : f32 to vector<1x32xf32>
    %10 = arith.mulf %8, %9 : vector<1x32xf32>
    %11 = arith.addf %7, %10 : vector<1x32xf32>
    %c0_10 = arith.constant 0 : index
    %c0_11 = arith.constant 0 : index
    %12 = vector.load %arg3[%c0_10, %c0_11] : memref<32x2xf32, #tpu.memory_space<vmem>>, vector<32x2xf32>
    %cst_12 = arith.constant dense<0.000000e+00> : vector<1x2xf32>
    %13 = tpu.matmul %6, %12, %cst_12 {dimension_numbers = #tpu.dot_dimension_numbers<[1], [0], [0], [1], [0, 0, 1, 1], [], []>} : vector<1x32xf32>, vector<32x2xf32>, vector<1x2xf32> -> vector<1x2xf32>
    %c0_13 = arith.constant 0 : index
    %c0_14 = arith.constant 0 : index
    %14 = vector.load %arg4[%c0_13, %c0_14] : memref<1x2xf32, #tpu.memory_space<vmem>>, vector<1x2xf32>
    %15 = arith.addf %13, %14 : vector<1x2xf32>
    %cst_15 = arith.constant 0.000000e+00 : f32
    %16 = vector.broadcast %cst_15 : f32 to vector<1x2xf32>
    %17 = arith.maximumf %15, %16 : vector<1x2xf32>
    %c0_16 = arith.constant 0 : index
    %c0_17 = arith.constant 0 : index
    %18 = vector.load %arg5[%c0_16, %c0_17] : memref<2x32xf32, #tpu.memory_space<vmem>>, vector<2x32xf32>
    %cst_18 = arith.constant dense<0.000000e+00> : vector<1x32xf32>
    %19 = tpu.matmul %17, %18, %cst_18 {dimension_numbers = #tpu.dot_dimension_numbers<[1], [0], [0], [1], [0, 0, 1, 1], [], []>} : vector<1x2xf32>, vector<2x32xf32>, vector<1x32xf32> -> vector<1x32xf32>
    %c0_19 = arith.constant 0 : index
    %c0_20 = arith.constant 0 : index
    %20 = vector.load %arg6[%c0_19, %c0_20] : memref<1x32xf32, #tpu.memory_space<vmem>>, vector<1x32xf32>
    %21 = arith.addf %19, %20 : vector<1x32xf32>
    %22 = arith.negf %21 : vector<1x32xf32>
    %23 = math.exp %22 : vector<1x32xf32>
    %cst_21 = arith.constant 1.000000e+00 : f32
    %24 = vector.broadcast %cst_21 : f32 to vector<1x32xf32>
    %25 = arith.addf %24, %23 : vector<1x32xf32>
    %26 = arith.divf %24, %25 : vector<1x32xf32>
    %c0_22 = arith.constant 0 : index
    %c0_23 = arith.constant 0 : index
    %27 = vector.load %arg7[%c0_22, %c0_23] : memref<32x2xf32, #tpu.memory_space<vmem>>, vector<32x2xf32>
    %cst_24 = arith.constant dense<0.000000e+00> : vector<1x2xf32>
    %28 = tpu.matmul %11, %27, %cst_24 {dimension_numbers = #tpu.dot_dimension_numbers<[1], [0], [0], [1], [0, 0, 1, 1], [], []>} : vector<1x32xf32>, vector<32x2xf32>, vector<1x2xf32> -> vector<1x2xf32>
    %cst_25 = arith.constant 0.000000e+00 : f32
    %29 = vector.broadcast %cst_25 : f32 to vector<1x2xf32>
    %30 = arith.maximumf %28, %29 : vector<1x2xf32>
    %c0_26 = arith.constant 0 : index
    %c0_27 = arith.constant 0 : index
    %31 = vector.load %arg8[%c0_26, %c0_27] : memref<2x32xf32, #tpu.memory_space<vmem>>, vector<2x32xf32>
    %cst_28 = arith.constant dense<0.000000e+00> : vector<1x32xf32>
    %32 = tpu.matmul %30, %31, %cst_28 {dimension_numbers = #tpu.dot_dimension_numbers<[1], [0], [0], [1], [0, 0, 1, 1], [], []>} : vector<1x2xf32>, vector<2x32xf32>, vector<1x32xf32> -> vector<1x32xf32>
    %33 = arith.negf %32 : vector<1x32xf32>
    %34 = math.exp %33 : vector<1x32xf32>
    %cst_29 = arith.constant 1.000000e+00 : f32
    %35 = vector.broadcast %cst_29 : f32 to vector<1x32xf32>
    %36 = arith.addf %35, %34 : vector<1x32xf32>
    %37 = arith.divf %35, %36 : vector<1x32xf32>
    %38 = arith.addf %26, %37 : vector<1x32xf32>
    %c0_30 = arith.constant 0 : index
    %c0_31 = arith.constant 0 : index
    %39 = vector.load %arg9[%c0_30, %c0_31] : memref<32x2xf32, #tpu.memory_space<vmem>>, vector<32x2xf32>
    %cst_32 = arith.constant dense<0.000000e+00> : vector<1x2xf32>
    %40 = tpu.matmul %38, %39, %cst_32 {dimension_numbers = #tpu.dot_dimension_numbers<[1], [0], [0], [1], [0, 0, 1, 1], [], []>} : vector<1x32xf32>, vector<32x2xf32>, vector<1x2xf32> -> vector<1x2xf32>
    %cst_33 = arith.constant 0.000000e+00 : f32
    %41 = vector.broadcast %cst_33 : f32 to vector<1x2xf32>
    %42 = arith.maximumf %40, %41 : vector<1x2xf32>
    %c0_34 = arith.constant 0 : index
    %c0_35 = arith.constant 0 : index
    %43 = vector.load %arg10[%c0_34, %c0_35] : memref<2x32xf32, #tpu.memory_space<vmem>>, vector<2x32xf32>
    %cst_36 = arith.constant dense<0.000000e+00> : vector<1x32xf32>
    %44 = tpu.matmul %42, %43, %cst_36 {dimension_numbers = #tpu.dot_dimension_numbers<[1], [0], [0], [1], [0, 0, 1, 1], [], []>} : vector<1x2xf32>, vector<2x32xf32>, vector<1x32xf32> -> vector<1x32xf32>
    %45 = arith.negf %44 : vector<1x32xf32>
    %46 = math.exp %45 : vector<1x32xf32>
    %cst_37 = arith.constant 1.000000e+00 : f32
    %47 = vector.broadcast %cst_37 : f32 to vector<1x32xf32>
    %48 = arith.addf %47, %46 : vector<1x32xf32>
    %49 = arith.divf %47, %48 : vector<1x32xf32>
    %cst_38 = arith.constant 1.000000e+00 : f32
    %50 = vector.broadcast %cst_38 : f32 to vector<1x32xf32>
    %51 = arith.addf %49, %50 : vector<1x32xf32>
    %52 = vector.shape_cast %51 : vector<1x32xf32> to vector<1x32x1xf32>
    %53 = vector.broadcast %52 : vector<1x32x1xf32> to vector<1x32x256xf32>
    %54 = arith.mulf %0, %53 : vector<1x32x256xf32>
    %c0_39 = arith.constant 0 : index
    %c0_40 = arith.constant 0 : index
    %c0_41 = arith.constant 0 : index
    %55 = vector.load %arg11[%c0_39, %c0_40, %c0_41] : memref<1x32x256xf32, #tpu.memory_space<vmem>>, vector<1x32x256xf32>
    tpu.vector_store %arg11[%c0_39, %c0_40, %c0_41], %54 {strides = array<i32>} : memref<1x32x256xf32, #tpu.memory_space<vmem>>, vector<1x32x256xf32>,
    %56 = vector.broadcast %52 : vector<1x32x1xf32> to vector<1x32x256xf32>
    %57 = arith.mulf %1, %56 : vector<1x32x256xf32>
    %c0_42 = arith.constant 0 : index
    %c0_43 = arith.constant 0 : index
    %c0_44 = arith.constant 0 : index
    %58 = vector.load %arg12[%c0_42, %c0_43, %c0_44] : memref<1x32x256xf32, #tpu.memory_space<vmem>>, vector<1x32x256xf32>
    tpu.vector_store %arg12[%c0_42, %c0_43, %c0_44], %57 {strides = array<i32>} : memref<1x32x256xf32, #tpu.memory_space<vmem>>, vector<1x32x256xf32>,
    return
  }
  func.func @transform_0(%arg0: i32) -> (i32, i32, i32) {
    %c0_i32 = arith.constant 0 : i32
    %c0_i32_0 = arith.constant 0 : i32
    %c0_i32_1 = arith.constant 0 : i32
    return %arg0, %c0_i32, %c0_i32_0 : i32, i32, i32
  }
  func.func @transform_1(%arg0: i32) -> (i32, i32, i32) {
    %c0_i32 = arith.constant 0 : i32
    %c0_i32_0 = arith.constant 0 : i32
    %c0_i32_1 = arith.constant 0 : i32
    return %arg0, %c0_i32, %c0_i32_0 : i32, i32, i32
  }
  func.func @transform_2(%arg0: i32) -> (i32, i32) {
    %c0_i32 = arith.constant 0 : i32
    %c0_i32_0 = arith.constant 0 : i32
    %c0_i32_1 = arith.constant 0 : i32
    return %c0_i32, %c0_i32_0 : i32, i32
  }
  func.func @transform_3(%arg0: i32) -> (i32, i32) {
    %c0_i32 = arith.constant 0 : i32
    %c0_i32_0 = arith.constant 0 : i32
    %c0_i32_1 = arith.constant 0 : i32
    return %c0_i32, %c0_i32_0 : i32, i32
  }
  func.func @transform_4(%arg0: i32) -> (i32, i32) {
    %c0_i32 = arith.constant 0 : i32
    %c0_i32_0 = arith.constant 0 : i32
    %c0_i32_1 = arith.constant 0 : i32
    return %c0_i32, %c0_i32_0 : i32, i32
  }
  func.func @transform_5(%arg0: i32) -> (i32, i32) {
    %c0_i32 = arith.constant 0 : i32
    %c0_i32_0 = arith.constant 0 : i32
    %c0_i32_1 = arith.constant 0 : i32
    return %c0_i32, %c0_i32_0 : i32, i32
  }
  func.func @transform_6(%arg0: i32) -> (i32, i32) {
    %c0_i32 = arith.constant 0 : i32
    %c0_i32_0 = arith.constant 0 : i32
    %c0_i32_1 = arith.constant 0 : i32
    return %c0_i32, %c0_i32_0 : i32, i32
  }
  func.func @transform_7(%arg0: i32) -> (i32, i32) {
    %c0_i32 = arith.constant 0 : i32
    %c0_i32_0 = arith.constant 0 : i32
    %c0_i32_1 = arith.constant 0 : i32
    return %c0_i32, %c0_i32_0 : i32, i32
  }
  func.func @transform_8(%arg0: i32) -> (i32, i32) {
    %c0_i32 = arith.constant 0 : i32
    %c0_i32_0 = arith.constant 0 : i32
    %c0_i32_1 = arith.constant 0 : i32
    return %c0_i32, %c0_i32_0 : i32, i32
  }
  func.func @transform_9(%arg0: i32) -> (i32, i32) {
    %c0_i32 = arith.constant 0 : i32
    %c0_i32_0 = arith.constant 0 : i32
    %c0_i32_1 = arith.constant 0 : i32
    return %c0_i32, %c0_i32_0 : i32, i32
  }
  func.func @transform_10(%arg0: i32) -> (i32, i32, i32) {
    %c0_i32 = arith.constant 0 : i32
    %c0_i32_0 = arith.constant 0 : i32
    %c0_i32_1 = arith.constant 0 : i32
    return %arg0, %c0_i32, %c0_i32_0 : i32, i32, i32
  }
  func.func @transform_11(%arg0: i32) -> (i32, i32, i32) {
    %c0_i32 = arith.constant 0 : i32
    %c0_i32_0 = arith.constant 0 : i32
    %c0_i32_1 = arith.constant 0 : i32
    return %arg0, %c0_i32, %c0_i32_0 : i32, i32, i32
  }
}

</mosaic_0001>

<bundles_post_ra>
// kernel: tpu_custom_call.1
= control target key start
LH: loop header
LB: loop body
LE: loop exit
PB: predicated region body
PF: predicated region fallthrough
CT: control target
= control target key end

     0   :  { %s2199_s0 = inlined_call_operand.hbm [shape: f32[2,32,256], index: 0, kind: input, shape index: {}]   ;;  %s2200_s1 = inlined_call_operand.hbm [shape: f32[2,32,256], index: 1, kind: input, shape index: {}]   ;;  %s2201_s2 = inlined_call_operand.vmem [shape: f32[32,2], index: 2, kind: input, shape index: {}]   ;;  %s2202_s3 = inlined_call_operand.vmem [shape: f32[1,2], index: 3, kind: input, shape index: {}]   ;;  %s2203_s4 = inlined_call_operand.vmem [shape: f32[2,32], index: 4, kind: input, shape index: {}]   ;;  %s2204_s5 = inlined_call_operand.vmem [shape: f32[1,32], index: 5, kind: input, shape index: {}]   ;;  %s2205_s6 = inlined_call_operand.vmem [shape: f32[32,2], index: 6, kind: input, shape index: {}]   ;;  %s2206_s7 = inlined_call_operand.vmem [shape: f32[2,32], index: 7, kind: input, shape index: {}]   ;;  %s2207_s8 = inlined_call_operand.vmem [shape: f32[32,2], index: 8, kind: input, shape index: {}]   ;;  %s2208_s9 = inlined_call_operand.vmem [shape: f32[2,32], index: 9, kind: input, shape index: {}]   ;;  %s2209_s10 = inlined_call_operand.hbm [shape: f32[2,32,256], index: 10, kind: output, shape index: {0}]   ;;  %s2210_s11 = inlined_call_operand.hbm [shape: f32[2,32,256], index: 11, kind: output, shape index: {1}]  }
   0x1   :  { %2221 = sst [smem:[#allocation19_spill]] %s2199_s0 }
   0x2   :  { %17 = vsyncpa [#allocation3], 0 }
   0x3   :  { %19 = vsyncpa [#allocation3 + $0x1], 0 }
   0x4   :  { %20 = vsyncpa [#allocation6], 0 }
   0x5   :  { %22 = vsyncpa [#allocation6 + $0x1], 0 }
   0x6   :  { %23 = vsyncpa [#allocation4], 0 }
   0x7   :  { %25 = vsyncpa [#allocation4 + $0x1], 0 }
   0x8   :  { %26 = vsyncpa [#allocation9], 0 }
   0x9   :  { %28 = vsyncpa [#allocation9 + $0x1], 0  ;;  %s1727_s17 = smov 0   ;;  %s1729_s18 = smov 0  }
   0xa   :  { %s1731_s19 = smov 0   ;;  %s1733_s20 = smov 0  }
   0xb LB: > { %2222 = sst [smem:[#allocation14_spill]] %s1642_s17  ;;  %s1748_s21 = sadd.s32 4294967295, %s1654_s20   ;;  %s1654_s20 = sphi %s1733_s20, %s2244_s20   ;;  %s1650_s19 = sphi %s1731_s19, %s2246_s19   ;;  %s1646_s18 = sphi %s1729_s18, %s2248_s18   ;;  %s1642_s17 = sphi %s1727_s17, %s2247_s17  }
   0xc   : > { %2223 = sst [smem:[#allocation15_spill]] %s1650_s19  ;;  %s1292_s22 = sadd.s32 4294967294, %s1654_s20  }
   0xd   : > { %s1752_s23 = sadd.s32 1, %s1654_s20   ;;  %s41_s24 = sadd.s32 1, %s1650_s19 }
   0xe   : > { %2224 = sst [smem:[#allocation16_spill]] %s1752_s23  ;;  %s38_s25 = ssub.s32 %s1654_s20, %s1752_s23 }
   0xf   : > { %p48_p0 = scmp.ne.s32.totalorder %s1650_s19, %s1646_s18  ;;  %p39_p1 = scmp.eq.s32.totalorder %s38_s25, 0 }
  0x10   : > { %p49_p2 = scmp.eq.s32.totalorder %s1654_s20, 0  ;;  %p54_p3 = scmp.ne.s32.totalorder %s1646_s18, %s1642_s17 }
  0x11   : > { %p55_p4 = scmp.eq.s32.totalorder %s1748_s21, 0  ;;  %p272_p7 = scmp.eq.s32.totalorder %s1748_s21, 1 }
  0x12   : > { %s1764_s26 = scalar_select %p39_p1, %s1650_s19, %s41_s24  }
  0x13   : > { %p1766_p5 = por %p49_p2, %p48_p0  ;;  %p1770_p6 = por %p55_p4, %p54_p3 }
  0x14   : > { %2225 = sst [smem:[#allocation17_spill]] %s1764_s26  ;;  %p278_p8 = scmp.eq.s32.totalorder %s1292_s22, 1 }
  0x15   : > { %s2227_s28 = scalar_select %p1770_p6, 1, 0 }
  0x16   : > { %p1439_p10 = scmp.lt.s32.totalorder %s1654_s20, 2  ;;  %p1777_p11 = por %p272_p7, %p48_p0 }
  0x17   : > { %p1781_p12 = por %p278_p8, %p54_p3  ;;  %s1786_s12 = sand.u32 1, %s1650_s19  }
  0x18   : > { %s2228_s29 = scalar_select %p1777_p11, 1, 0 }
  0x19   : > { %s2229_s30 = scalar_select %p1781_p12, 1, 0 }
  0x1a   : > { %s2213_s13 = sshll.u32 %s1654_s20, 10  ;;  %s2212_s14 = sshll.u32 %s1786_s12, 6 }
  0x1b   : > { %2230 = sst [smem:[#allocation18_spill]] %s2229_s30  ;;  %s2231_s0 = sld [smem:[#allocation19_spill]] }
  0x1c   : > { %s352_s24 = scalar_lea.vmem [#allocation2], %s2212_s14  ;;  %p1801_p13 = pnand %p1439_p10, %p1766_p5 }
  0x1d   : > { %s359_s25 = sshll.u32 %s352_s24, 4  ;;  %s1805_s25 = int_to_ptr.vmem [resolvable:$true] %s359_s25 }
  0x1e   : > { %p1494_p1 = pneg %p1801_p13 }
  0x21   : > { %s1795_s22 = scalar_lea.hbm %s2231_s0, %s2213_s13  ;;  %s1497_s27 = scalar_lea.hbm %s2231_s0, 2048 }
  0x22   : > { %s1492_s15 = scalar_lea.hbm %s1795_s22, 1024  ;;  %p1498_p4 = scmp.lt.u32.totalorder %s1795_s22, %s2231_s0 }
  0x23   : > { %p1493_p0 = scmp.ne.s32.totalorder %s1795_s22, %s1492_s15  ;;  %p1499_p5 = scmp.lt.u32.totalorder %s1497_s27, %s1492_s15 }
  0x24   : > { %p1501_p8 = scmp.lt.u32.totalorder %s1492_s15, %s1795_s22 }
  0x25   : > { %p1495_p2 = pnand %p1494_p1, %p1493_p0  ;;  %p1500_p7 = por %p1499_p5, %p1498_p4 }
  0x27   : > { %p1496_p3 = pneg %p1495_p2  ;;  %p1502_p10 = por %p1501_p8, %p1500_p7 }
  0x29   : > { %p1503_p9 = pnand %p1502_p10, %p1496_p3 }
  0x2b   : > { %1506 = shalt.err (!%p1503_p9)
}
  0x2c   : > { %s1507_s19 = scalar_lea.vmem %s1805_s25, 1024  ;;  %s1656_s16 = smov [#allocation2]  }
  0x2d   : > { %p1508_p0 = scmp.ne.s32.totalorder %s1805_s25, %s1507_s19  ;;  %s1512_s24 = sshll.u32 %s1656_s16, 4  ;;  %s1513_s24 = int_to_ptr.vmem [resolvable:$false] %s1512_s24 }
  0x2e   : > { %s1514_s13 = scalar_lea.vmem %s1513_s24, 2048  ;;  %p1515_p11 = scmp.lt.s32.totalorder %s1805_s25, %s1513_s24 }
  0x2f   : > { %p1510_p2 = pnand %p1508_p0, %p1494_p1  ;;  %p1516_p4 = scmp.lt.s32.totalorder %s1514_s13, %s1507_s19 }
  0x31   : > { %p1511_p12 = pneg %p1510_p2  ;;  %p1517_p5 = por %p1516_p4, %p1515_p11 }
  0x33   : > { %p1518_p7 = pnand %p1517_p5, %p1511_p12 }
  0x35   : > { %1521 = shalt.err (!%p1518_p7)
}
  0x36   : > { %s2219_s14 = smov 256   ;;  %s1658_s15 = smov 16  }
  0x37   : > { %s2233_s19 = scalar_lea.sflag [#allocation3], %s1786_s12  ;;  %p1301_p9 = scmp.ge.s32.totalorder %s1654_s20, 1 }
  0x38   : > { %1428 = dma.hbm_to_vmem [thread:$0]  (!%p1801_p13), %s1795_s22, 1024, %s1805_s25, %s2233_s19, %s2219_s14, %s2219_s14, %s1658_s15  }
  0x39   : > { %p388_p11 = scmp.lt.s32.totalorder %s1654_s20, 3  ;;  %s2235_s16 = sshll.u32 %s1654_s20, 10 }
  0x3a   : > { %s1849_s0 = scalar_lea.hbm %s2200_s1, %s2235_s16  ;;  %s2236_s23 = sshll.u32 %s1786_s12, 6 }
  0x3b   : > { %p1840_p12 = pnand %p1301_p9, %p388_p11  ;;  %s373_s30 = scalar_lea.vmem [#allocation5], %s2236_s23 }
  0x3c   : > { %s380_s17 = sshll.u32 %s373_s30, 4  ;;  %s370_s22 = scalar_lea.sflag [#allocation6], %s1786_s12  ;;  %s1853_s17 = int_to_ptr.vmem [resolvable:$true] %s380_s17 }
  0x3d   : > { %s1522_s25 = scalar_lea.hbm %s1849_s0, 1024  ;;  %s1527_s16 = scalar_lea.hbm %s2200_s1, 2048 }
  0x3e   : > { %p1523_p3 = scmp.ne.s32.totalorder %s1849_s0, %s1522_s25  ;;  %p1528_p0 = scmp.lt.u32.totalorder %s1849_s0, %s2200_s1 }
  0x3f   : > { %p1529_p2 = scmp.lt.u32.totalorder %s1527_s16, %s1522_s25  ;;  %p1531_p5 = scmp.lt.u32.totalorder %s1522_s25, %s1849_s0 }
  0x40   : > { %p1525_p8 = pnand %p1523_p3, %p1494_p1 }
  0x41   : > { %p1530_p4 = por %p1529_p2, %p1528_p0 }
  0x42   : > { %p1526_p10 = pneg %p1525_p8 }
  0x43   : > { %p1532_p7 = por %p1531_p5, %p1530_p4 }
  0x45   : > { %p1533_p9 = pnand %p1532_p7, %p1526_p10 }
  0x47   : > { %1536 = shalt.err (!%p1533_p9)
}
  0x48   : > { %s1537_s23 = scalar_lea.vmem %s1853_s17, 1024  ;;  %s1659_s30 = smov [#allocation5]  }
  0x49   : > { %p1538_p11 = scmp.ne.s32.totalorder %s1853_s17, %s1537_s23  ;;  %s1542_s19 = sshll.u32 %s1659_s30, 4  ;;  %s1543_s19 = int_to_ptr.vmem [resolvable:$false] %s1542_s19 }
  0x4a   : > { %s1544_s14 = scalar_lea.vmem %s1543_s19, 2048  ;;  %p1545_p6 = scmp.lt.s32.totalorder %s1853_s17, %s1543_s19 }
  0x4b   : > { %p1540_p3 = pnand %p1538_p11, %p1494_p1  ;;  %p1546_p0 = scmp.lt.s32.totalorder %s1544_s14, %s1537_s23 }
  0x4d   : > { %p1541_p8 = pneg %p1540_p3  ;;  %p1547_p2 = por %p1546_p0, %p1545_p6 }
  0x4f   : > { %p1548_p4 = pnand %p1547_p2, %p1541_p8 }
  0x51   : > { %1551 = shalt.err (!%p1548_p4)
}
  0x52   : > { %s2237_s25 = smov 256   ;;  %392 = sbr.rel (%p1840_p12) target bundleno = 1554 (0x612), region = 60 }
  0x53   : > { %1431 = dma.hbm_to_vmem [thread:$0]  (!%p1801_p13), %s1849_s0, 1024, %s1853_s17, %s370_s22, %s2237_s25, %s2237_s25, %s1658_s15  }
  0x54   : > { %s1887_s24 = sand.u32 (!%p1840_p12), 1, %s1646_s18   ;;  %p2238_p6 = scmp.ne.s32.totalorder (!%p1840_p12), %s2227_s28, 0 }
  0x55   : > { %s1890_s16 = sshll.u32 (!%p1840_p12), %s1887_s24, 6  ;;  %s395_s26 = scalar_lea.sflag (!%p1840_p12), [#allocation3], %s1887_s24 }
  0x56   : > { %s398_s13 = scalar_lea.vmem (!%p1840_p12), [#allocation2], %s1890_s16 }
  0x59   : > { %1625 = dma.done.wait (%p2238_p6), %s395_s26, 1024  }
  0x5a   : > { %1627 = vsyncadd (%p2238_p6), %s395_s26, 4294966272  ;;  %s404_s0 = scalar_lea.sflag [#allocation6], %s1887_s24  ;;  %s1900_s17 = scalar_lea.vmem [#allocation5], %s1890_s16 }
  0x5b   : > { %1629 = dma.done.wait (%p2238_p6), %s404_s0, 1024  }
  0x5c   : > { %1631 = vsyncadd (%p2238_p6), %s404_s0, 4294966272  ;;  %v1906_v0 = vld [vmem:[%s398_s13 + $0x20] sm:$0xff]  ;;  %v1908_v1 = vld [vmem:[%s398_s13 + $0x28] sm:$0xff]  ;;  %v1660_v19 = vmov 0.0|0.0   ;;  %vm1661_vm0 = vmmov 0   ;;  %v1662_v23 = vmov 0.0   ;;  %v545_v40 = vlaneseq }
  0x5d   : > { %v1910_v2 = vld [vmem:[%s398_s13] sm:$0xff]  ;;  %v478_v3 = vadd.f32 %v1908_v1, %v1906_v0  ;;  %v1914_v4 = vld [vmem:[%s398_s13 + $0x8] sm:$0xff]  ;;  %v1916_v5 = vld [vmem:[%s398_s13 + $0x30] sm:$0xff]  ;;  %v494_v15 = vmax.f32 %v1906_v0, %v1908_v1  ;;  %1399 = vmatprep.subr.bf16.mxu0 %v1660_v19  ;;  %1359 = vmatprep.mubr.msk.f32.mxu0 %vm1661_vm0, %v1662_v23  ;;  %vm556_vm1 = vcmask 130112   ;;  %vm563_vm2 = vcmask 195712   ;;  %s2081_s30 = scalar_lea.vmem [#allocation7], %s1890_s16 }
  0x5e   : > { %v1918_v6 = vld [vmem:[%s398_s13 + $0x38] sm:$0xff]  ;;  %v472_v7 = vadd.f32 %v1914_v4, %v1910_v2  ;;  %v1922_v8 = vld [vmem:[%s398_s13 + $0x10] sm:$0xff]  ;;  %v488_v13 = vmax.f32 %v1910_v2, %v1914_v4  ;;  %v536_v16 = vld [vmem:[%s2201_s2] sm:$0xff]  ;;  %1362 = vmatprep.subr.mxu1 %v1662_v23  ;;  %1364 = vmatprep.mubr.msk.f32.mxu1 %vm1661_vm0, %v1662_v23  ;;  %v546_v43 = vand.u32 127, %v545_v40  ;;  %v1998_v46 = vshrl.u32 %v545_v40, 7  ;;  %s2086_s19 = scalar_lea.vmem [#allocation8], %s1890_s16 }
  0x5f   : > { %v1924_v9 = vld [vmem:[%s398_s13 + $0x18] sm:$0xff]  ;;  %479 = vadd.xlane.f32.xlu1 %v478_v3  ;;  %v481_v10 = vadd.f32 %v1918_v6, %v1916_v5  ;;  %v497_v14 = vmax.f32 %v1916_v5, %v1918_v6  ;;  %v537_v17 = vld [vmem:[%s2201_s2 + $0x8] sm:$0xff]  ;;  %v538_v20 = vld [vmem:[%s2201_s2 + $0x10] sm:$0xff]  ;;  %vm570_vm3 = vcmask 261312   ;;  %vm572_vm4 = vcmask 261120   ;;  %s1328_s14 = sshll.u32 %s1748_s21, 10 }
  0x60   : > { %473 = vadd.xlane.f32.xlu0 %v472_v7  ;;  %v475_v11 = vadd.f32 %v1924_v9, %v1922_v8  ;;  %v491_v12 = vmax.f32 %v1922_v8, %v1924_v9  ;;  %v1400_v18 = vpack.c.bf16 %v537_v17, %v536_v16  ;;  %v539_v21 = vld [vmem:[%s2201_s2 + $0x18] sm:$0xff]  ;;  %v1959_v24 = vld [vmem:[%s1900_s17] sm:$0xff]  ;;  %v1962_v25 = vld [vmem:[%s1900_s17 + $0x8] sm:$0xff]  ;;  %v551_v47 = vadd.s32 4294967288, %v546_v43  ;;  %s1148_s16 = sshll.u32 %s2081_s30, 4  ;;  %s2107_s26 = scalar_lea.hbm %s2209_s10, %s1328_s14  ;;  %s2110_s16 = int_to_ptr.vmem [resolvable:$true] %s1148_s16 }
  0x61   : > { %v1403_v22 = vpack.c.bf16 %v539_v21, %v538_v20  ;;  %v1965_v26 = vld [vmem:[%s1900_s17 + $0x10] sm:$0xff]  ;;  %v516_v27 = vadd.f32 %v1962_v25, %v1959_v24  ;;  %v1970_v28 = vld [vmem:[%s1900_s17 + $0x18] sm:$0xff]  ;;  %v1973_v29 = vld [vmem:[%s1900_s17 + $0x20] sm:$0xff]  ;;  %v504_v33 = vmax.f32 %v1959_v24, %v1962_v25  ;;  %v565_v49 = vadd.s32 4294967272, %v546_v43  ;;  %s1164_s13 = sshll.u32 %s2086_s19, 4  ;;  %s2119_s28 = scalar_lea.hbm %s2210_s11, %s1328_s14  ;;  %s2121_s13 = int_to_ptr.vmem [resolvable:$true] %s1164_s13 }
  0x62   : > { %1401 = vmatpush3.bf16.msra.mxu0 %v1400_v18  ;;  %v1976_v30 = vld [vmem:[%s1900_s17 + $0x28] sm:$0xff]  ;;  %v519_v31 = vadd.f32 %v1970_v28, %v1965_v26  ;;  %v1985_v34 = vld [vmem:[%s1900_s17 + $0x30] sm:$0xff]  ;;  %v1988_v35 = vld [vmem:[%s1900_s17 + $0x38] sm:$0xff]  ;;  %v507_v36 = vmax.f32 %v1965_v26, %v1970_v28  ;;  %v558_v52 = vadd.s32 4294967280, %v546_v43  ;;  %v554_v53 = vsub.s32 %v551_v47, %v1998_v46  ;;  %s1130_s12 = scalar_lea.sflag [#allocation4], %s1887_s24  ;;  %s1552_s15 = scalar_lea.vmem %s2110_s16, 1024 }
  0x63   : > { %482 = vadd.xlane.f32.xlu1 %v481_v10  ;;  %1402 = vmatprep.subr.bf16.mxu0 %v1660_v19  ;;  %v522_v32 = vadd.f32 %v1976_v30, %v1973_v29  ;;  %v525_v37 = vadd.f32 %v1988_v35, %v1985_v34  ;;  %v510_v38 = vmax.f32 %v1973_v29, %v1976_v30  ;;  %vm652_vm5 = vcmask 1041408   ;;  %p1553_p13 = scmp.ne.s32.totalorder %s2110_s16, %s1552_s15  ;;  %p2239_p1 = scmp.ne.s32.totalorder %s2228_s29, 0 }
  0x64   : > { %476 = vadd.xlane.f32.xlu0 %v475_v11  ;;  %v513_v39 = vmax.f32 %v1985_v34, %v1988_v35  ;;  %v549_v55 = vsub.s32 %v546_v43, %v1998_v46  ;;  %v568_v59 = vsub.s32 %v565_v49, %v1998_v46  ;;  %v561_v62 = vsub.s32 %v558_v52, %v1998_v46  ;;  %v540_v52 = vld [vmem:[%s2202_s3] sm:$0x1]  ;;  %s1663_s27 = smov [#allocation7]  }
  0x65   : > { %vm648_vm6 = vcmask 15360   ;;  %p1554_p12 = pnand %p1553_p13, %p2239_p1  ;;  %s1556_s22 = sshll.u32 %s1663_s27, 4  ;;  %s1557_s22 = int_to_ptr.vmem [resolvable:$false] %s1556_s22 }
  0x66   : > { %1404 = vmatpush3.bf16.msra.mxu0 %v1403_v22  ;;  %s1558_s23 = scalar_lea.vmem %s1557_s22, 2048  ;;  %p1559_p5 = scmp.lt.s32.totalorder %s2110_s16, %s1557_s22 }
  0x67   : > { %492 = vmax.xlane.f32.xlu1 %v491_v12  ;;  %1378 = vmatprep.subr.mxu0 %v1662_v23  ;;  %p1555_p10 = pneg %p1554_p12  ;;  %p1560_p7 = scmp.lt.s32.totalorder %s1558_s23, %s1552_s15 }
  0x68   : > { %489 = vmax.xlane.f32.xlu0 %v488_v13 }
  0x69   : > { %p1561_p9 = por %p1560_p7, %p1559_p5 }
  0x6b   : > { %498 = vmax.xlane.f32.xlu1 %v497_v14  ;;  %p1562_p11 = pnand %p1561_p9, %p1555_p10 }
  0x6c   : > { %495 = vmax.xlane.f32.xlu0 %v494_v15 }
  0x6f   : > { %520 = vadd.xlane.f32.xlu1 %v519_v31 }
  0x70   : > { %517 = vadd.xlane.f32.xlu0 %v516_v27 }
  0x73   : > { %505 = vmax.xlane.f32.xlu1 %v504_v33 }
  0x74   : > { %523 = vadd.xlane.f32.xlu0 %v522_v32 }
  0x77   : > { %526 = vadd.xlane.f32.xlu1 %v525_v37 }
  0x78   : > { %508 = vmax.xlane.f32.xlu0 %v507_v36 }
  0x7b   : > { %514 = vmax.xlane.f32.xlu1 %v513_v39 }
  0x7c   : > { %511 = vmax.xlane.f32.xlu0 %v510_v38 }
  0xec   : > { %v480_v41 = vpop.xlane.xlu1 %479 }
  0xed   : > { %v474_v42 = vpop.xlane.xlu0 %473  ;;  %v486_v60 = vmul.f32 0.00390625, %v480_v41 }
  0xee   : > { %v484_v50 = vmul.f32 0.00390625, %v474_v42 }
  0xf0   : > { %v483_v44 = vpop.xlane.xlu1 %482 }
  0xf1   : > { %v477_v45 = vpop.xlane.xlu0 %476  ;;  %v487_v58 = vmul.f32 0.00390625, %v483_v44 }
  0xf2   : > { %v485_v48 = vmul.f32 0.00390625, %v477_v45 }
  0xf4   : > { %v493_v51 = vpop.xlane.xlu1 %492 }
  0xf5   : > { %v501_v54 = vadd.f32 %v493_v51, %v485_v48  ;;  %v490_v56 = vpop.xlane.xlu0 %489 }
  0xf6   : > { %v500_v57 = vadd.f32 %v490_v56, %v484_v50  ;;  %v646_v50 = vld [vmem:[%s2203_s4] sm:$0x3] }
  0xf7   : > { %v555_v63 = vrot.slane %v501_v54, %v554_v53  ;;  %1363 = vmatpush3.msk.msra.mxu1 %vm652_vm5, %v646_v50  ;;  %v733_v54 = vld [vmem:[%s2205_s6 + $0x8] sm:$0xff]  ;;  %v1080_v50 = vsub.s32 0, %v1998_v46 }
  0xf8   : > { %v499_v61 = vpop.xlane.xlu1 %498  ;;  %v550_v3 = vrot.slane %v500_v57, %v549_v55  ;;  %1405 = vmatprep.subr.bf16.mxu1 %v1660_v19 }
  0xf9   : > { %v503_v7 = vadd.f32 %v499_v61, %v487_v58  ;;  %v496_v10 = vpop.xlane.xlu0 %495  ;;  %v735_v61 = vld [vmem:[%s2205_s6 + $0x18] sm:$0xff] }
  0xfa   : > { %v502_v11 = vadd.f32 %v496_v10, %v486_v60  ;;  %v557_v14 = vsel %vm556_vm1, %v555_v63, %v550_v3  ;;  %v734_v60 = vld [vmem:[%s2205_s6 + $0x10] sm:$0xff]  ;;  %v832_v63 = vld [vmem:[%s2206_s7] sm:$0x3] }
  0xfb   : > { %v569_v12 = vrot.slane %v503_v7, %v568_v59 }
  0xfc   : > { %v562_v13 = vrot.slane %v502_v11, %v561_v62  ;;  %v521_v18 = vpop.xlane.xlu1 %520 }
  0xfd   : > { %v518_v17 = vpop.xlane.xlu0 %517  ;;  %v529_v22 = vmul.f32 0.00390625, %v521_v18 }
  0xfe   : > { %v564_v15 = vsel %vm563_vm2, %v562_v13, %v557_v14  ;;  %v528_v20 = vmul.f32 0.00390625, %v518_v17  ;;  %v916_v13 = vld [vmem:[%s2207_s8] sm:$0xff]  ;;  %v917_v14 = vld [vmem:[%s2207_s8 + $0x8] sm:$0xff]  ;;  %v919_v17 = vld [vmem:[%s2207_s8 + $0x18] sm:$0xff] }
  0xff   : > { %v571_v16 = vsel %vm570_vm3, %v569_v12, %v564_v15  ;;  %v918_v15 = vld [vmem:[%s2207_s8 + $0x10] sm:$0xff] }
 0x100   : > { %1360 = vmatmul.mubr.msk.f32.vlgmr.msra.gmra.mrb[0].mxu0 %vm572_vm4, %v571_v16  ;;  %v506_v27 = vpop.xlane.xlu1 %505  ;;  %v1412_v16 = vpack.c.bf16 %v917_v14, %v916_v13  ;;  %v1415_v18 = vpack.c.bf16 %v919_v17, %v918_v15 }
 0x101   : > { %1380 = vmatprep.mubr.msk.f32.mxu0 %vm1661_vm0, %v1662_v23  ;;  %v524_v21 = vpop.xlane.xlu0 %523  ;;  %v532_v31 = vadd.f32 %v528_v20, %v506_v27  ;;  %1379 = vmatpush3.msk.msra.mxu0 %vm652_vm5, %v832_v63  ;;  %v647_v20 = vld [vmem:[%s2204_s5] sm:$0x1] }
 0x102   : > { %v530_v33 = vmul.f32 0.00390625, %v524_v21  ;;  %1394 = vmatprep.subr.mxu0 %v1662_v23 }
 0x103   : > { %v743_v36 = vrot.slane %v532_v31, %v549_v55 }
 0x104   : > { %v527_v44 = vpop.xlane.xlu1 %526 }
 0x105   : > { %v509_v32 = vpop.xlane.xlu0 %508  ;;  %v531_v45 = vmul.f32 0.00390625, %v527_v44 }
 0x106   : > { %v533_v37 = vadd.f32 %v529_v22, %v509_v32 }
 0x108   : > { %v747_v38 = vrot.slane %v533_v37, %v554_v53  ;;  %v515_v47 = vpop.xlane.xlu1 %514  ;;  %v732_v53 = vld [vmem:[%s2205_s6] sm:$0xff] }
 0x109   : > { %v512_v39 = vpop.xlane.xlu0 %511  ;;  %v535_v48 = vadd.f32 %v531_v45, %v515_v47  ;;  %v1406_v58 = vpack.c.bf16 %v733_v54, %v732_v53 }
 0x10a   : > { %v748_v40 = vsel %vm556_vm1, %v747_v38, %v743_v36  ;;  %v534_v41 = vadd.f32 %v530_v33, %v512_v39 }
 0x10b   : > { %v757_v49 = vrot.slane %v535_v48, %v568_v59 }
 0x10c   : > { %v752_v42 = vrot.slane %v534_v41, %v561_v62  ;;  %v1409_v62 = vpack.c.bf16 %v735_v61, %v734_v60 }
 0x10e   : > { %v753_v43 = vsel %vm563_vm2, %v752_v42, %v748_v40 }
 0x10f   : > { %v758_v51 = vsel %vm570_vm3, %v757_v49, %v753_v43 }
 0x1d3   : > { %v641_v55 = vpop.f32.mrb[0].mxu0 }
 0x1d4   : > { %v642_v56 = vadd.f32 %v641_v55, %v540_v52  ;;  %v1361_v57 = vpop.f32.mrb[1].mxu0 }
 0x1d6   : > { %v645_v59 = vmax.f32 %v642_v56, 0.0 }
 0x1d8   : > { %1365 = vmatmul.mubr.msk.f32.vlgmr.msra.gmra.mrb[0].mxu1 %vm648_vm6, %v645_v59 }
 0x1d9   : > { %1407 = vmatpush3.bf16.msra.mxu1 %v1406_v58  ;;  %1375 = vmatprep.mubr.msk.f32.mxu1 %vm1661_vm0, %v1662_v23 }
 0x1da   : > { %1408 = vmatprep.subr.bf16.mxu1 %v1660_v19 }
 0x1dd   : > { %1410 = vmatpush3.bf16.msra.mxu1 %v1409_v62 }
 0x1de   : > { %1411 = vmatprep.subr.bf16.mxu1 %v1660_v19 }
 0x1e0   : > { %1376 = vmatmul.mubr.msk.f32.vlgmr.msra.gmra.mrb[2].mxu1 %vm572_vm4, %v758_v51 }
 0x1e1   : > { %1391 = vmatprep.mubr.msk.f32.mxu1 %vm1661_vm0, %v1662_v23  ;;  %1413 = vmatpush3.bf16.msra.mxu1 %v1412_v16 }
 0x1e2   : > { %1414 = vmatprep.subr.bf16.mxu1 %v1660_v19 }
 0x1e5   : > { %1416 = vmatpush3.bf16.msra.mxu1 %v1415_v18 }
 0x2ab   : > { %v722_v3 = vpop.f32.mrb[0].mxu1 }
 0x2ac   : > { %v1366_v7 = vpop.f32.mrb[1].mxu1  ;;  %v723_v21 = vadd.f32 %v722_v3, %v647_v20 }
 0x2ae   : > { %v1309_v22 = vmul.f32 -1.442695, %v723_v21 }
 0x2b0   : > { %1480 = vpow2.f32 %v1309_v22 }
 0x2b3   : > { %v827_v10 = vpop.f32.mrb[2].mxu1 }
 0x2b4   : > { %v831_v11 = vmax.f32 %v827_v10, 0.0  ;;  %v1377_v12 = vpop.f32.mrb[3].mxu1 }
 0x2b6   : > { %1381 = vmatmul.mubr.msk.f32.vlgmr.msra.gmra.mrb[2].mxu0 %vm648_vm6, %v831_v11 }
 0x2b7   : > { %1396 = vmatprep.mubr.msk.f32.mxu0 %vm1661_vm0, %v1662_v23  ;;  %v994_v23 = vld [vmem:[%s2208_s9] sm:$0x3] }
 0x2b8   : > { %1395 = vmatpush3.msk.msra.mxu0 %vm652_vm5, %v994_v23 }
 0x2ba   : > { %v1481_v33 = vpop.eup %1480 }
 0x2bb   : > { %v729_v19 = vadd.f32 1.0, %v1481_v33 }
 0x389   : > { %v905_v27 = vpop.f32.mrb[2].mxu0 }
 0x38a   : > { %v1313_v31 = vmul.f32 -1.442695, %v905_v27  ;;  %v1382_v32 = vpop.f32.mrb[3].mxu0 }
 0x38c   : > { %1482 = vpow2.f32 %v1313_v31 }
 0x38d   : > { %1484 = vrcp.f32 %v729_v19 }
 0x396   : > { %v1483_v36 = vpop.eup %1482 }
 0x397   : > { %v912_v37 = vadd.f32 1.0, %v1483_v36  ;;  %v1485_v38 = vpop.eup %1484 }
 0x399   : > { %1486 = vrcp.f32 %v912_v37 }
 0x3a3   : > { %v1487_v39 = vpop.eup %1486 }
 0x3a4   : > { %v915_v40 = vadd.f32 %v1487_v39, %v1485_v38 }
 0x3a6   : > { %1392 = vmatmul.mubr.msk.f32.vlgmr.msra.gmra.mrb[4].mxu1 %vm572_vm4, %v915_v40 }
 0x479   : > { %v989_v41 = vpop.f32.mrb[4].mxu1 }
 0x47a   : > { %v993_v42 = vmax.f32 %v989_v41, 0.0  ;;  %v1393_v43 = vpop.f32.mrb[5].mxu1 }
 0x47c   : > { %1397 = vmatmul.mubr.msk.f32.vlgmr.msra.gmra.mrb[4].mxu0 %vm648_vm6, %v993_v42 }
 0x54f   : > { %v1067_v44 = vpop.f32.mrb[4].mxu0 }
 0x550   : > { %v1317_v45 = vmul.f32 -1.442695, %v1067_v44  ;;  %v1398_v47 = vpop.f32.mrb[5].mxu0 }
 0x552   : > { %1488 = vpow2.f32 %v1317_v45 }
 0x55c   : > { %v1489_v48 = vpop.eup %1488 }
 0x55d   : > { %v1074_v49 = vadd.f32 1.0, %v1489_v48 }
 0x55f   : > { %1490 = vrcp.f32 %v1074_v49 }
 0x569   : > { %v1491_v51 = vpop.eup %1490 }
 0x56a   : > { %v1077_v52 = vadd.f32 1.0, %v1491_v51 }
 0x56c   : > { %v1081_v53 = vrot.slane %v1077_v52, %v1080_v50 }
 0x56e   : > { %1087 = vbcast.lane.b32.xlu1 %v1081_v53, 264  ;;  %1083 = vbcast.lane.b32.xlu0 %v1081_v53, 256 }
 0x572   : > { %1091 = vbcast.lane.b32.xlu1 %v1081_v53, 272 }
 0x576   : > { %1095 = vbcast.lane.b32.xlu1 %v1081_v53, 280 }
 0x5e0   : > { %v1088_v54 = vpop.permute.xlu1 %1087  ;;  %v1084_v55 = vpop.permute.xlu0 %1083 }
 0x5e1   : > { %v1099_v56 = vmul.f32 %v1088_v54, %v1922_v8  ;;  %v1100_v57 = vmul.f32 %v1088_v54, %v1924_v9  ;;  %v1115_v58 = vmul.f32 %v1088_v54, %v1965_v26  ;;  %v1116_v59 = vmul.f32 %v1088_v54, %v1970_v28 }
 0x5e2   : > { %v1097_v46 = vmul.f32 %v1084_v55, %v1910_v2  ;;  %v1098_v60 = vmul.f32 %v1084_v55, %v1914_v4  ;;  %v1113_v61 = vmul.f32 %v1084_v55, %v1959_v24  ;;  %v1114_v62 = vmul.f32 %v1084_v55, %v1962_v25 }
 0x5e3   : > { %1107 = vst [vmem:[%s2081_s30 + $0x10] sm:$0xff] %v1099_v56  ;;  %1108 = vst [vmem:[%s2081_s30 + $0x18] sm:$0xff] %v1100_v57 }
 0x5e4   : > { %1123 = vst [vmem:[%s2086_s19 + $0x10] sm:$0xff] %v1115_v58  ;;  %1124 = vst [vmem:[%s2086_s19 + $0x18] sm:$0xff] %v1116_v59  ;;  %v1092_v2 = vpop.permute.xlu1 %1091 }
 0x5e5   : > { %1105 = vst [vmem:[%s2081_s30] sm:$0xff] %v1097_v46  ;;  %1106 = vst [vmem:[%s2081_s30 + $0x8] sm:$0xff] %v1098_v60  ;;  %v1101_v4 = vmul.f32 %v1092_v2, %v1906_v0  ;;  %v1102_v8 = vmul.f32 %v1092_v2, %v1908_v1  ;;  %v1117_v9 = vmul.f32 %v1092_v2, %v1973_v29 }
 0x5e6   : > { %1121 = vst [vmem:[%s2086_s19] sm:$0xff] %v1113_v61  ;;  %1122 = vst [vmem:[%s2086_s19 + $0x8] sm:$0xff] %v1114_v62  ;;  %v1118_v24 = vmul.f32 %v1092_v2, %v1976_v30 }
 0x5e7   : > { %1109 = vst [vmem:[%s2081_s30 + $0x20] sm:$0xff] %v1101_v4  ;;  %1110 = vst [vmem:[%s2081_s30 + $0x28] sm:$0xff] %v1102_v8 }
 0x5e8   : > { %1125 = vst [vmem:[%s2086_s19 + $0x20] sm:$0xff] %v1117_v9  ;;  %1126 = vst [vmem:[%s2086_s19 + $0x28] sm:$0xff] %v1118_v24  ;;  %v1096_v0 = vpop.permute.xlu1 %1095 }
 0x5e9   : > { %v1103_v1 = vmul.f32 %v1096_v0, %v1916_v5  ;;  %v1104_v25 = vmul.f32 %v1096_v0, %v1918_v6  ;;  %v1119_v26 = vmul.f32 %v1096_v0, %v1985_v34  ;;  %v1120_v28 = vmul.f32 %v1096_v0, %v1988_v35 }
 0x5eb   : > { %1111 = vst [vmem:[%s2081_s30 + $0x30] sm:$0xff] %v1103_v1  ;;  %1112 = vst [vmem:[%s2081_s30 + $0x38] sm:$0xff] %v1104_v25 }
 0x5ec   : > { %1127 = vst [vmem:[%s2086_s19 + $0x30] sm:$0xff] %v1119_v26  ;;  %1128 = vst [vmem:[%s2086_s19 + $0x38] sm:$0xff] %v1120_v28 }
 0x5ed   : > { %1565 = shalt.err (!%p1562_p11)
}
 0x5ee   : > { %s1566_s30 = scalar_lea.hbm %s2107_s26, 1024  ;;  %s1570_s25 = scalar_lea.hbm %s2209_s10, 2048 }
 0x5ef   : > { %p1567_p3 = scmp.ne.s32.totalorder %s2107_s26, %s1566_s30  ;;  %p1571_p2 = scmp.lt.u32.totalorder %s2107_s26, %s2209_s10 }
 0x5f0   : > { %p1572_p4 = scmp.lt.u32.totalorder %s1570_s25, %s1566_s30  ;;  %p1574_p13 = scmp.lt.u32.totalorder %s1566_s30, %s2107_s26 }
 0x5f1   : > { %p1568_p8 = pnand %p1567_p3, %p2239_p1 }
 0x5f2   : > { %p1573_p6 = por %p1572_p4, %p1571_p2 }
 0x5f3   : > { %p1569_p0 = pneg %p1568_p8 }
 0x5f4   : > { %p1575_p12 = por %p1574_p13, %p1573_p6 }
 0x5f6   : > { %p1576_p10 = pnand %p1575_p12, %p1569_p0 }
 0x5f8   : > { %1579 = shalt.err (!%p1576_p10)
}
 0x5f9   : > { %s1664_s17 = smov 256   ;;  %s1665_s15 = smov 16  }
 0x5fa   : > { %1421 = dma.vmem_to_hbm [thread:$0]  (%p2239_p1), %s2110_s16, 1024, %s2107_s26, %s1130_s12, %s1664_s17, %s1664_s17, %s1665_s15  }
 0x5fb   : > { %s1135_s27 = scalar_lea.sflag [#allocation9], %s1887_s24  ;;  %s1580_s22 = scalar_lea.vmem %s2121_s13, 1024 }
 0x5fc   : > { %p1581_p5 = scmp.ne.s32.totalorder %s2121_s13, %s1580_s22  ;;  %s1666_s23 = smov [#allocation8]  }
 0x5fd   : > { %s1584_s30 = sshll.u32 %s1666_s23, 4  ;;  %s1585_s30 = int_to_ptr.vmem [resolvable:$false] %s1584_s30 }
 0x5fe   : > { %p1582_p7 = pnand %p1581_p5, %p2239_p1  ;;  %s1586_s19 = scalar_lea.vmem %s1585_s30, 2048 }
 0x5ff   : > { %p1587_p11 = scmp.lt.s32.totalorder %s2121_s13, %s1585_s30  ;;  %p1588_p3 = scmp.lt.s32.totalorder %s1586_s19, %s1580_s22 }
 0x600   : > { %p1583_p9 = pneg %p1582_p7 }
 0x601   : > { %p1589_p8 = por %p1588_p3, %p1587_p11 }
 0x603   : > { %p1590_p0 = pnand %p1589_p8, %p1583_p9 }
 0x605   : > { %1593 = shalt.err (!%p1590_p0)
}
 0x606   : > { %s1594_s16 = scalar_lea.hbm %s2119_s28, 1024  ;;  %s1598_s14 = scalar_lea.hbm %s2210_s11, 2048 }
 0x607   : > { %p1595_p2 = scmp.ne.s32.totalorder %s2119_s28, %s1594_s16  ;;  %p1599_p13 = scmp.lt.u32.totalorder %s2119_s28, %s2210_s11 }
 0x608   : > { %p1600_p12 = scmp.lt.u32.totalorder %s1598_s14, %s1594_s16  ;;  %p1602_p5 = scmp.lt.u32.totalorder %s1594_s16, %s2119_s28 }
 0x609   : > { %p1596_p4 = pnand %p1595_p2, %p2239_p1 }
 0x60a   : > { %p1601_p10 = por %p1600_p12, %p1599_p13 }
 0x60b   : > { %p1597_p6 = pneg %p1596_p4 }
 0x60c   : > { %p1603_p7 = por %p1602_p5, %p1601_p10 }
 0x60e   : > { %p1604_p9 = pnand %p1603_p7, %p1597_p6 }
 0x610   : > { %1607 = shalt.err (!%p1604_p9)
}
 0x611   : > { %1422 = dma.vmem_to_hbm [thread:$0]  (%p2239_p1), %s2121_s13, 1024, %s2119_s28, %s1135_s27, %s1664_s17, %s1664_s17, %s1665_s15  }
 0x612 PF: > { %s2240_s0 = sld [smem:[#allocation14_spill]]  ;;  %s2241_s22 = sld [smem:[#allocation18_spill]] }
 0x613   : > { %p2243_p3 = scmp.ge.s32.totalorder %s1654_s20, 2 }
 0x618   : > { %s1179_s23 = sand.u32 1, %s2240_s0   ;;  %p2242_p11 = scmp.ne.s32.totalorder %s2241_s22, 0 }
 0x619   : > { %s1180_s30 = scalar_lea.sflag [#allocation4], %s1179_s23 }
 0x61a   : > { %p1433_p8 = pnand %p2243_p3, %p2242_p11 }
 0x61c   : > { %1633 = dma.done.wait (!%p1433_p8), %s1180_s30, 1024  }
 0x61d   : > { %1635 = vsyncadd (!%p1433_p8), %s1180_s30, 4294966272  ;;  %s1189_s29 = scalar_lea.sflag [#allocation9], %s1179_s23 }
 0x61e   : > { %1637 = dma.done.wait (!%p1433_p8), %s1189_s29, 1024  }
 0x61f   : > { %1639 = vsyncadd (!%p1433_p8), %s1189_s29, 4294966272  ;;  %s2244_s20 = sld [smem:[#allocation16_spill]]  ;;  %s2245_s24 = sld [smem:[#allocation15_spill]] }
 0x620   : > { %s2246_s19 = sld [smem:[#allocation17_spill]]  ;;  %s2247_s17 = smov %s1646_s18 }
 0x625   : > { %p31_p1 = scmp.ge.s32.totalorder %s2244_s20, 4   ;;  %s2248_s18 = smov %s2245_s24 }
 0x627   :  { %33 = sbr.rel (!%p31_p1) target bundleno = 11 (0xb), region = 135 }
 0x62e   :  { %1194 = vsyncpa [#allocation3], 1 }
 0x62f   :  { %1196 = vsyncpa [#allocation3 + $0x1], 1 }
 0x630   :  { %1197 = vsyncpa [#allocation6], 1 }
 0x631   :  { %1199 = vsyncpa [#allocation6 + $0x1], 1 }
 0x632   :  { %1200 = vsyncpa [#allocation4], 1 }
 0x633   :  { %1202 = vsyncpa [#allocation4 + $0x1], 1 }
 0x634   :  { %1203 = vsyncpa [#allocation9], 1 }
 0x635   :  { %1205 = vsyncpa [#allocation9 + $0x1], 1 }

</bundles_post_ra>
